<compile_context>
chip_gen: v7x
topology: tpu7x:2x2x1
jax: 0.10.0
libtpu: 0.0.40
codegen_flags: <defaults>
</compile_context>

<pallas_src>
import functools

import jax
import jax.numpy as jnp
from jax.experimental import pallas as pl
from jax.experimental.pallas import tpu as pltpu

LANE = 128
MAX_TILE_ROWS = 1024   # (1024, 128) f32 block = 512 KiB/input; ~2.5 MiB VMEM total
NSPLIT = 2             # leading "parallel" axis (sharded across TCs on megacore chips)


def _cdiv(a, b):
    return -(-a // b)


def _round_up(a, b):
    return _cdiv(a, b) * b


def _sq_diff_sum_kernel(x_ref, y_ref, o_ref, acc_ref, *,
                        rows, tile_rows, tiles_per_split):
    """Accumulate sum((x - y)^2) per parallel split into a lane-dense output."""
    c = pl.program_id(0)   # parallel split index
    t = pl.program_id(1)   # reduction step within the split

    @pl.when(t == 0)
    def _():
        acc_ref[...] = jnp.zeros_like(acc_ref)

    # Unclamped global tile index -> global row ids covered by this step.
    # Rows at/past `rows` (ragged tail, or clamped duplicate tiles of an
    # uneven split) are masked to contribute exactly 0.
    g = c * tiles_per_split + t
    row0 = g * tile_rows
    row_ids = row0 + jax.lax.broadcasted_iota(jnp.int32, (tile_rows, LANE), 0)
    valid = row_ids < rows

    d = x_ref[...].astype(jnp.float32) - y_ref[...].astype(jnp.float32)
    d = jnp.where(valid, d, 0.0)
    acc_ref[...] += d * d          # VPU-only per-step accumulation

    @pl.when(t == pl.num_programs(1) - 1)
    def _():
        total = jnp.sum(acc_ref[...])                       # single epilogue reduce
        o_ref[...] = jnp.broadcast_to(total, (8, LANE))     # lane-dense store


@jax.jit
def _mse_pallas(xt, yt):
    """mean((xt - yt)^2) with the reduction done in a Pallas TPU kernel."""
    assert xt.shape == yt.shape, (xt.shape, yt.shape)
    n = xt.size
    xf = xt.reshape(-1)
    yf = yt.reshape(-1)

    # Lane-align the flat length. For typical NN tensors n % 128 == 0, so this
    # is a free metadata reshape (no pad, no copy, no dtype cast). The rare
    # ragged case falls back to a zero pad ((0-0)^2 contributes nothing).
    rem = n % LANE
    if rem:
        pad = LANE - rem
        xf = jnp.pad(xf, (0, pad))
        yf = jnp.pad(yf, (0, pad))
    rows = xf.shape[0] // LANE
    x2 = xf.reshape(rows, LANE)
    y2 = yf.reshape(rows, LANE)

    tile_rows = int(min(MAX_TILE_ROWS, _round_up(rows, 8)))
    tiles_total = _cdiv(rows, tile_rows)
    nsplit = NSPLIT if tiles_total >= NSPLIT else 1
    tiles_per_split = _cdiv(tiles_total, nsplit)

    def in_map(c, t):
        # Clamp so duplicate tiles of a padded split range stay in bounds;
        # their contribution is masked off inside the kernel.
        return (jnp.minimum(c * tiles_per_split + t, tiles_total - 1), 0)

    kernel = functools.partial(
        _sq_diff_sum_kernel,
        rows=rows, tile_rows=tile_rows, tiles_per_split=tiles_per_split)

    partials = pl.pallas_call(
        kernel,
        out_shape=jax.ShapeDtypeStruct((nsplit * 8, LANE), jnp.float32),
        grid_spec=pltpu.PrefetchScalarGridSpec(
            num_scalar_prefetch=0,
            grid=(nsplit, tiles_per_split),
            in_specs=[
                pl.BlockSpec((tile_rows, LANE), in_map),
                pl.BlockSpec((tile_rows, LANE), in_map),
            ],
            # one (8, 128) partial-sum block per parallel split
            out_specs=pl.BlockSpec((8, LANE), lambda c, t: (c, 0)),
            scratch_shapes=[pltpu.VMEM((tile_rows, LANE), jnp.float32)],
        ),
        compiler_params=pltpu.CompilerParams(
            dimension_semantics=("parallel", "arbitrary"),
            vmem_limit_bytes=32 * 1024 * 1024,
        ),
    )(x2, y2)

    # Row c*8, lane 0 of each split block holds that split's partial sum.
    sq_sum = jnp.sum(partials[::8, 0])
    return sq_sum / jnp.float32(n)


def multiple_mse_loss(x, y):
    """JAX/Pallas equivalent of MultipleMSELoss.forward (reduction='mean')."""
    loss_sum = jnp.float32(0.0)
    multi_loss = []
    for xt, yt in zip(x, y):
        if isinstance(yt, tuple):
            if len(yt) == 2:
                yt, wt = yt
                lt = "mse"
            elif len(yt) == 3:
                yt, wt, lt = yt
            else:
                raise NotImplementedError
        else:
            wt, lt = 1.0, "mse"
        if lt == "mse":
            loss = _mse_pallas(xt, yt)
        else:
            raise NotImplementedError
        loss_sum = loss_sum + loss * jnp.float32(wt)
        multi_loss.append(loss)
    return loss_sum, multi_loss


if __name__ == "__main__":
    key = jax.random.PRNGKey(0)
    k1, k2, k3, k4 = jax.random.split(key, 4)

    # Two prediction/target pairs (NCHW-style shapes as the slowfast heads emit)
    x1 = jax.random.normal(k1, (2, 4, 16, 16), dtype=jnp.float32)
    y1 = jax.random.normal(k2, (2, 4, 16, 16), dtype=jnp.float32)
    x2 = jax.random.normal(k3, (2, 8, 8, 8), dtype=jnp.float32)
    y2 = jax.random.normal(k4, (2, 8, 8, 8), dtype=jnp.float32)

    x = [x1, x2]
    # exercise both the weighted-tuple and plain-tensor target paths
    y = [(y1, 0.5), y2]

    loss_sum, multi_loss = multiple_mse_loss(x, y)
    loss_sum = jax.block_until_ready(loss_sum)
    multi_loss = [jax.block_until_ready(l) for l in multi_loss]

    # pure-JAX reference check
    ref0 = jnp.mean((x1 - y1) ** 2)
    ref1 = jnp.mean((x2 - y2) ** 2)
    ref_sum = ref0 * 0.5 + ref1
    assert jnp.allclose(multi_loss[0], ref0, rtol=1e-5, atol=1e-5)
    assert jnp.allclose(multi_loss[1], ref1, rtol=1e-5, atol=1e-5)
    assert jnp.allclose(loss_sum, ref_sum, rtol=1e-5, atol=1e-5)

    print("KERNEL_OK")
</pallas_src>

<mosaic_0001>
module attributes {stable_mosaic.version = 11 : i64} {
  func.func @_sq_diff_sum_kernel(%arg0: i32, %arg1: i32, %arg2: memref<16x128xf32, #tpu.memory_space<vmem>>, %arg3: memref<16x128xf32, #tpu.memory_space<vmem>>, %arg4: memref<8x128xf32, #tpu.memory_space<vmem>>, %arg5: memref<16x128xf32, #tpu.memory_space<vmem>>) attributes {dimension_semantics = [#tpu.dimension_semantics<parallel>, #tpu.dimension_semantics<arbitrary>], iteration_bounds = array<i64: 1, 1>, scalar_prefetch = 0 : i64, scratch_operands = 1 : i64, tpu.core_type = #tpu.core_type<tc>, window_params = [{transform_indices = @transform_0, window_bounds = array<i64: 16, 128>}, {transform_indices = @transform_1, window_bounds = array<i64: 16, 128>}, {transform_indices = @transform_2, window_bounds = array<i64: 8, 128>}]} {
    %c0_i32 = arith.constant 0 : i32
    %0 = arith.cmpi eq, %arg1, %c0_i32 : i32
    %1 = arith.extui %0 : i1 to i32
    %c0_i32_0 = arith.constant 0 : i32
    %2 = arith.cmpi ne, %1, %c0_i32_0 : i32
    scf.if %2 {
      %cst_11 = arith.constant 0.000000e+00 : f32
      %23 = vector.broadcast %cst_11 : f32 to vector<16x128xf32>
      %c0_12 = arith.constant 0 : index
      %c0_13 = arith.constant 0 : index
      %24 = vector.load %arg5[%c0_12, %c0_13] : memref<16x128xf32, #tpu.memory_space<vmem>>, vector<16x128xf32>
      tpu.vector_store %arg5[%c0_12, %c0_13], %23 {strides = array<i32>} : memref<16x128xf32, #tpu.memory_space<vmem>>, vector<16x128xf32>,
    } else {
    }
    %c1_i32 = arith.constant 1 : i32
    %3 = arith.muli %arg0, %c1_i32 : i32
    %4 = arith.addi %3, %arg1 : i32
    %c16_i32 = arith.constant 16 : i32
    %5 = arith.muli %4, %c16_i32 : i32
    %6 = tpu.iota {dimensions = array<i32: 0>} : vector<16x128xi32>
    %7 = vector.broadcast %5 : i32 to vector<16x128xi32>
    %8 = arith.addi %7, %6 : vector<16x128xi32>
    %c16_i32_1 = arith.constant 16 : i32
    %9 = vector.broadcast %c16_i32_1 : i32 to vector<16x128xi32>
    %10 = arith.cmpi slt, %8, %9 : vector<16x128xi32>
    %c0 = arith.constant 0 : index
    %c0_2 = arith.constant 0 : index
    %11 = vector.load %arg2[%c0, %c0_2] : memref<16x128xf32, #tpu.memory_space<vmem>>, vector<16x128xf32>
    %c0_3 = arith.constant 0 : index
    %c0_4 = arith.constant 0 : index
    %12 = vector.load %arg3[%c0_3, %c0_4] : memref<16x128xf32, #tpu.memory_space<vmem>>, vector<16x128xf32>
    %13 = arith.subf %11, %12 : vector<16x128xf32>
    %cst = arith.constant 0.000000e+00 : f32
    %14 = vector.broadcast %cst : f32 to vector<16x128xf32>
    %15 = arith.select %10, %13, %14 : vector<16x128xi1>, vector<16x128xf32>
    %c0_5 = arith.constant 0 : index
    %c0_6 = arith.constant 0 : index
    %16 = vector.load %arg5[%c0_5, %c0_6] : memref<16x128xf32, #tpu.memory_space<vmem>>, vector<16x128xf32>
    %17 = arith.mulf %15, %15 : vector<16x128xf32>
    %18 = arith.addf %16, %17 : vector<16x128xf32>
    %c0_7 = arith.constant 0 : index
    %c0_8 = arith.constant 0 : index
    %19 = vector.load %arg5[%c0_7, %c0_8] : memref<16x128xf32, #tpu.memory_space<vmem>>, vector<16x128xf32>
    tpu.vector_store %arg5[%c0_7, %c0_8], %18 {strides = array<i32>} : memref<16x128xf32, #tpu.memory_space<vmem>>, vector<16x128xf32>,
    %c0_i32_9 = arith.constant 0 : i32
    %20 = arith.cmpi eq, %arg1, %c0_i32_9 : i32
    %21 = arith.extui %20 : i1 to i32
    %c0_i32_10 = arith.constant 0 : i32
    %22 = arith.cmpi ne, %21, %c0_i32_10 : i32
    scf.if %22 {
      %c0_11 = arith.constant 0 : index
      %c0_12 = arith.constant 0 : index
      %23 = vector.load %arg5[%c0_11, %c0_12] : memref<16x128xf32, #tpu.memory_space<vmem>>, vector<16x128xf32>
      %24 = vector.shape_cast %23 : vector<16x128xf32> to vector<1x16x128xf32>
      %cst_13 = arith.constant dense<0.000000e+00> : vector<1xf32>
      %25 = vector.multi_reduction <add>, %24, %cst_13 [1, 2] : vector<1x16x128xf32> to vector<1xf32>
      %26 = vector.shape_cast %25 : vector<1xf32> to vector<1x1x1xf32>
      %27 = vector.extract %26[0, 0, 0] : f32 from vector<1x1x1xf32>
      %28 = vector.broadcast %27 : f32 to vector<8x128xf32>
      %c0_14 = arith.constant 0 : index
      %c0_15 = arith.constant 0 : index
      %29 = vector.load %arg4[%c0_14, %c0_15] : memref<8x128xf32, #tpu.memory_space<vmem>>, vector<8x128xf32>
      tpu.vector_store %arg4[%c0_14, %c0_15], %28 {strides = array<i32>} : memref<8x128xf32, #tpu.memory_space<vmem>>, vector<8x128xf32>,
    } else {
    }
    return
  }
  func.func @transform_0(%arg0: i32, %arg1: i32) -> (i32, i32) {
    %c1_i32 = arith.constant 1 : i32
    %0 = arith.muli %arg0, %c1_i32 : i32
    %1 = arith.addi %0, %arg1 : i32
    %c0_i32 = arith.constant 0 : i32
    %2 = arith.minsi %1, %c0_i32 : i32
    %c0_i32_0 = arith.constant 0 : i32
    %c0_i32_1 = arith.constant 0 : i32
    return %2, %c0_i32_0 : i32, i32
  }
  func.func @transform_1(%arg0: i32, %arg1: i32) -> (i32, i32) {
    %c1_i32 = arith.constant 1 : i32
    %0 = arith.muli %arg0, %c1_i32 : i32
    %1 = arith.addi %0, %arg1 : i32
    %c0_i32 = arith.constant 0 : i32
    %2 = arith.minsi %1, %c0_i32 : i32
    %c0_i32_0 = arith.constant 0 : i32
    %c0_i32_1 = arith.constant 0 : i32
    return %2, %c0_i32_0 : i32, i32
  }
  func.func @transform_2(%arg0: i32, %arg1: i32) -> (i32, i32) {
    %c0_i32 = arith.constant 0 : i32
    %c0_i32_0 = arith.constant 0 : i32
    return %arg0, %c0_i32 : i32, i32
  }
}

</mosaic_0001>

<bundles_post_ra>
// kernel: _mse_pallas.1
= control target key start
LH: loop header
LB: loop body
LE: loop exit
PB: predicated region body
PF: predicated region fallthrough
CT: control target
= control target key end

     0   :  { %s172_s0 = inlined_call_operand.vmem [shape: f32[16,128], index: 0, kind: input, shape index: {}]   ;;  %s173_s1 = inlined_call_operand.vmem [shape: f32[16,128], index: 1, kind: input, shape index: {}]   ;;  %s174_s2 = inlined_call_operand.vmem [shape: f32[8,128], index: 2, kind: output, shape index: {}]  }
   0x1   :  { %v91_v0 = vld [vmem:[%s172_s0] sm:$0xff]  ;;  %v92_v1 = vld [vmem:[%s172_s0 + $0x8] sm:$0xff] }
   0x2   :  { %v93_v2 = vld [vmem:[%s173_s1] sm:$0xff]  ;;  %v94_v3 = vld [vmem:[%s173_s1 + $0x8] sm:$0xff] }
   0x3   :  { %v95_v4 = vsub.f32 %v91_v0, %v93_v2  ;;  %v96_v5 = vsub.f32 %v92_v1, %v94_v3 }
   0x5   :  { %v101_v6 = vmul.f32 %v95_v4, %v95_v4  ;;  %v102_v7 = vmul.f32 %v96_v5, %v96_v5 }
   0x7   :  { %v112_v8 = vadd.f32 %v102_v7, %v101_v6 }
   0x9   :  { %113 = vadd.xlane.f32.xlu0 %v112_v8 }
  0x96   :  { %v114_v9 = vpop.xlane.xlu0 %113 }
  0x97   :  { %v115_v10 = vrot.slane %v114_v9, 4 }
  0x99   :  { %v116_v11 = vadd.f32 %v115_v10, %v114_v9 }
  0x9b   :  { %v117_v12 = vrot.slane %v116_v11, 2 }
  0x9d   :  { %v118_v13 = vadd.f32 %v117_v12, %v116_v11 }
  0x9f   :  { %v119_v14 = vrot.slane %v118_v13, 1 }
  0xa1   :  { %v120_v15 = vadd.f32 %v119_v14, %v118_v13 }
  0xa3   :  { %140 = vpush %v120_v15 }
  0xd4   :  { %s141_s0 = spop %140 }
  0xd5   :  { %v122_v16 = vstv %s141_s0 }
  0xd6   :  { %123 = vst [vmem:[%s174_s2] sm:$0xff] %v122_v16 }

</bundles_post_ra>
